<compile_context>
chip_gen: v7x
topology: tpu7x:2x2x1
jax: 0.10.0
libtpu: 0.0.40
codegen_flags: <defaults>
</compile_context>

<pallas_src>
import jax
import jax.numpy as jnp
from jax.experimental import pallas as pl
from jax.experimental.pallas import tpu as pltpu


_LANE = 128
_SUBLANE = 8
# Per-ref, per-pipeline-buffer block budget. 3 refs (v, v_th, out) x 2 buffers
# x 2 MiB = 12 MiB VMEM — safe on every generation (v5e/v6e/v7x).
_TARGET_BLOCK_BYTES = 2 * 1024 * 1024


def _fire_kernel(v_ref, vth_ref, out_ref):
    # Elementwise Heaviside forward: spike = 1.0 where v >= v_th else 0.0.
    # Compare + cast (no jnp.where / constant vregs / vselect needed).
    out_ref[...] = (v_ref[...] >= vth_ref[...]).astype(out_ref.dtype)


def _choose_slab(padded_total: int):
    """Pick a lane-dense (rows, width) slab for `padded_total` elements.

    `padded_total` is a multiple of 8*128.  Prefer the widest last dim
    (multiple of 128) that keeps the row count a multiple of 8 so every vreg
    and HBM tile is fully dense; fall back to 128 lanes.
    """
    for width in (2048, 1024, 512, 256, 128):
        if padded_total % width == 0:
            rows = padded_total // width
            if rows % _SUBLANE == 0:
                return rows, width
    return padded_total // _LANE, _LANE


def fire(v: jax.Array, v_th: jax.Array) -> jax.Array:
    """spike = (v >= v_th).astype(v.dtype), elementwise, same-shape operands."""
    assert v.shape == v_th.shape, "v and v_th must have the same shape"
    orig_shape = v.shape
    dtype = v.dtype
    total = v.size
    itemsize = jnp.dtype(dtype).itemsize

    # 1) Pad the flat length up to a multiple of 8*128 so the slab is fully
    #    vreg/HBM-tile dense, then pick a wide lane-dense (rows, width) slab.
    base = _LANE * _SUBLANE
    t1 = pl.cdiv(total, base) * base
    rows, width = _choose_slab(t1)

    # 2) Pick the row-tile: as big as the VMEM budget allows (capped at the
    #    row count), rounded to a multiple of 8 sublanes.
    #    (If spikes are ever emitted in bf16/int8, round to 16/32 instead.)
    tm = (_TARGET_BLOCK_BYTES // (width * itemsize)) // _SUBLANE * _SUBLANE
    tm = max(_SUBLANE, min(tm, rows))

    # 3) Pad rows so the grid divides evenly — no partial blocks, no masked
    #    stores.  (At the demo size this is a no-op: rows=8, tm=8, grid=(1,).)
    n_blocks = pl.cdiv(rows, tm)
    rows_p = n_blocks * tm
    padded_total = rows_p * width

    vf = v.reshape(-1)
    vthf = v_th.reshape(-1)
    if padded_total != total:
        pad = padded_total - total
        # Pad so padded lanes compare to 0 (v=0 < v_th=1); sliced off anyway.
        vf = jnp.pad(vf, (0, pad), constant_values=0)
        vthf = jnp.pad(vthf, (0, pad), constant_values=1)

    v2 = vf.reshape(rows_p, width)
    vth2 = vthf.reshape(rows_p, width)

    out2 = pl.pallas_call(
        _fire_kernel,
        out_shape=jax.ShapeDtypeStruct((rows_p, width), dtype),
        grid=(n_blocks,),
        in_specs=[
            pl.BlockSpec((tm, width), lambda i: (i, 0)),
            pl.BlockSpec((tm, width), lambda i: (i, 0)),
        ],
        out_specs=pl.BlockSpec((tm, width), lambda i: (i, 0)),
        compiler_params=pltpu.CompilerParams(
            dimension_semantics=("parallel",)
        ),
    )(v2, vth2)

    out_flat = out2.reshape(-1)
    if padded_total != total:
        out_flat = out_flat[:total]
    return out_flat.reshape(orig_shape)


if __name__ == "__main__":
    key = jax.random.PRNGKey(0)
    k1, k2 = jax.random.split(key)

    # NCHW membrane potential: batch=2, channels=4, spatial=16x16.
    shape = (2, 4, 16, 16)
    v = jax.random.normal(k1, shape, dtype=jnp.float32)
    # Per-neuron thresholds (same shape as v, per the module spec).
    v_th = 0.5 + 0.1 * jax.random.normal(k2, shape, dtype=jnp.float32)

    spike = fire(v, v_th)
    spike = jax.block_until_ready(spike)

    # Sanity check against a pure-JAX reference of the forward semantics.
    ref = (v >= v_th).astype(jnp.float32)
    assert spike.shape == shape
    assert spike.dtype == jnp.float32
    assert bool(jnp.all(spike == ref))

    print("KERNEL_OK")
</pallas_src>

<mosaic_0001>
module attributes {stable_mosaic.version = 11 : i64} {
  func.func @_fire_kernel(%arg0: i32, %arg1: memref<8x256xf32, #tpu.memory_space<vmem>>, %arg2: memref<8x256xf32, #tpu.memory_space<vmem>>, %arg3: memref<8x256xf32, #tpu.memory_space<vmem>>) attributes {dimension_semantics = [#tpu.dimension_semantics<parallel>], iteration_bounds = array<i64: 1>, scalar_prefetch = 0 : i64, scratch_operands = 0 : i64, tpu.core_type = #tpu.core_type<tc>, window_params = [{transform_indices = @transform_0, window_bounds = array<i64: 8, 256>}, {transform_indices = @transform_1, window_bounds = array<i64: 8, 256>}, {transform_indices = @transform_2, window_bounds = array<i64: 8, 256>}]} {
    %c0 = arith.constant 0 : index
    %c0_0 = arith.constant 0 : index
    %0 = vector.load %arg1[%c0, %c0_0] : memref<8x256xf32, #tpu.memory_space<vmem>>, vector<8x256xf32>
    %c0_1 = arith.constant 0 : index
    %c0_2 = arith.constant 0 : index
    %1 = vector.load %arg2[%c0_1, %c0_2] : memref<8x256xf32, #tpu.memory_space<vmem>>, vector<8x256xf32>
    %2 = arith.cmpf oge, %0, %1 : vector<8x256xf32>
    %3 = arith.extui %2 : vector<8x256xi1> to vector<8x256xi32>
    %4 = arith.sitofp %3 : vector<8x256xi32> to vector<8x256xf32>
    %c0_3 = arith.constant 0 : index
    %c0_4 = arith.constant 0 : index
    %5 = vector.load %arg3[%c0_3, %c0_4] : memref<8x256xf32, #tpu.memory_space<vmem>>, vector<8x256xf32>
    tpu.vector_store %arg3[%c0_3, %c0_4], %4 {strides = array<i32>} : memref<8x256xf32, #tpu.memory_space<vmem>>, vector<8x256xf32>,
    return
  }
  func.func @transform_0(%arg0: i32) -> (i32, i32) {
    %c0_i32 = arith.constant 0 : i32
    %c0_i32_0 = arith.constant 0 : i32
    return %arg0, %c0_i32 : i32, i32
  }
  func.func @transform_1(%arg0: i32) -> (i32, i32) {
    %c0_i32 = arith.constant 0 : i32
    %c0_i32_0 = arith.constant 0 : i32
    return %arg0, %c0_i32 : i32, i32
  }
  func.func @transform_2(%arg0: i32) -> (i32, i32) {
    %c0_i32 = arith.constant 0 : i32
    %c0_i32_0 = arith.constant 0 : i32
    return %arg0, %c0_i32 : i32, i32
  }
}

</mosaic_0001>

<bundles_post_ra>
// kernel: tpu_custom_call.1
= control target key start
LH: loop header
LB: loop body
LE: loop exit
PB: predicated region body
PF: predicated region fallthrough
CT: control target
= control target key end

     0   :  { %7 = vsyncpa [#allocation3], 0  ;;  %s197_s0 = inlined_call_operand.hbm [shape: f32[8,256], index: 0, kind: input, shape index: {}]   ;;  %s198_s1 = inlined_call_operand.hbm [shape: f32[8,256], index: 1, kind: input, shape index: {}]   ;;  %s199_s2 = inlined_call_operand.hbm [shape: f32[8,256], index: 2, kind: output, shape index: {}]  }
   0x1   :  { %8 = vsyncpa [#allocation6], 0 }
   0x2   :  { %9 = vsyncpa [#allocation4], 0  ;;  %s142_s9 = smov [#allocation2]   ;;  %s143_s11 = smov [#allocation5]  }
   0x3   :  { %s16_s10 = sshll.u32 %s142_s9, 4  ;;  %s26_s12 = sshll.u32 %s143_s11, 4  ;;  %s17_s10 = int_to_ptr.vmem [resolvable:$true] %s16_s10  ;;  %s27_s12 = int_to_ptr.vmem [resolvable:$true] %s26_s12 }
   0x4   :  { %s70_s15 = scalar_lea.hbm %s197_s0, 256 }
   0x5   :  { %p71_p0 = scmp.ne.s32.totalorder %s197_s0, %s70_s15  ;;  %p74_p1 = scmp.lt.u32.totalorder %s70_s15, %s197_s0 }
   0x7   :  { %p76_p2 = pnand %p74_p1, %p71_p0 }
   0x9   :  { %79 = shalt.err (!%p76_p2)
}
   0xa   :  { %s80_s20 = scalar_lea.vmem %s17_s10, 256  ;;  %p85_p4 = scmp.lt.s32.totalorder %s17_s10, %s17_s10 }
   0xb   :  { %p81_p3 = scmp.ne.s32.totalorder %s17_s10, %s80_s20  ;;  %p86_p5 = scmp.lt.s32.totalorder %s80_s20, %s80_s20 }
   0xd   :  { %p87_p6 = por %p86_p5, %p85_p4 }
   0xf   :  { %p88_p7 = pnand %p87_p6, %p81_p3 }
  0x11   :  { %91 = shalt.err (!%p88_p7)
}
  0x12   :  { %19 = dma.hbm_to_vmem [thread:$0]  %s197_s0, 256, %s17_s10, [#allocation3]  }
  0x13   :  { %s92_s25 = scalar_lea.hbm %s198_s1, 256 }
  0x14   :  { %p93_p8 = scmp.ne.s32.totalorder %s198_s1, %s92_s25  ;;  %p96_p9 = scmp.lt.u32.totalorder %s92_s25, %s198_s1 }
  0x16   :  { %p98_p10 = pnand %p96_p9, %p93_p8 }
  0x18   :  { %101 = shalt.err (!%p98_p10)
}
  0x19   :  { %s102_s30 = scalar_lea.vmem %s27_s12, 256  ;;  %p107_p12 = scmp.lt.s32.totalorder %s27_s12, %s27_s12 }
  0x1a   :  { %p103_p11 = scmp.ne.s32.totalorder %s27_s12, %s102_s30  ;;  %p108_p13 = scmp.lt.s32.totalorder %s102_s30, %s102_s30 }
  0x1c   :  { %p109_p0 = por %p108_p13, %p107_p12 }
  0x1e   :  { %p110_p1 = pnand %p109_p0, %p103_p11 }
  0x20   :  { %113 = shalt.err (!%p110_p1)
}
  0x21   :  { %29 = dma.hbm_to_vmem [thread:$0]  %s198_s1, 256, %s27_s12, [#allocation6]  }
  0x22   :  { %136 = dma.done.wait [#allocation3], 256  }
  0x23   :  { %137 = vsyncadd [#allocation3], 4294967040 }
  0x24   :  { %138 = dma.done.wait [#allocation6], 256  }
  0x25   :  { %139 = vsyncadd [#allocation6], 4294967040  ;;  %s144_s4 = smov [#allocation7]   ;;  %v36_v0 = vld [vmem:[#allocation2] sm:$0xff]  ;;  %v38_v1 = vld [vmem:[#allocation5] sm:$0xff]  ;;  %v145_v4 = vmov 0.0  }
  0x26   :  { %s54_s5 = sshll.u32 %s144_s4, 4  ;;  %v37_v2 = vld [vmem:[#allocation2 + $0x8] sm:$0xff]  ;;  %vm40_vm0 = vcmp.ge.f32.partialorder %v36_v0, %v38_v1  ;;  %v39_v3 = vld [vmem:[#allocation5 + $0x8] sm:$0xff]  ;;  %s55_s5 = int_to_ptr.vmem [resolvable:$true] %s54_s5 }
  0x27   :  { %v64_v5 = vsel %vm40_vm0, 1.0, %v145_v4  ;;  %vm41_vm1 = vcmp.ge.f32.partialorder %v37_v2, %v39_v3  ;;  %s114_s6 = scalar_lea.vmem %s55_s5, 256  ;;  %p119_p3 = scmp.lt.s32.totalorder %s55_s5, %s55_s5 }
  0x28   :  { %46 = vst [vmem:[#allocation7] sm:$0xff] %v64_v5  ;;  %v65_v6 = vsel %vm41_vm1, 1.0, %v145_v4  ;;  %p115_p2 = scmp.ne.s32.totalorder %s55_s5, %s114_s6  ;;  %p120_p4 = scmp.lt.s32.totalorder %s114_s6, %s114_s6 }
  0x29   :  { %47 = vst [vmem:[#allocation7 + $0x8] sm:$0xff] %v65_v6 }
  0x2a   :  { %p121_p5 = por %p120_p4, %p119_p3 }
  0x2c   :  { %p122_p6 = pnand %p121_p5, %p115_p2 }
  0x2e   :  { %125 = shalt.err (!%p122_p6)
}
  0x2f   :  { %s126_s8 = scalar_lea.hbm %s199_s2, 256 }
  0x30   :  { %p127_p7 = scmp.ne.s32.totalorder %s199_s2, %s126_s8  ;;  %p130_p8 = scmp.lt.u32.totalorder %s126_s8, %s199_s2 }
  0x32   :  { %p132_p9 = pnand %p130_p8, %p127_p7 }
  0x34   :  { %135 = shalt.err (!%p132_p9)
}
  0x35   :  { %57 = dma.vmem_to_hbm [thread:$0]  %s55_s5, 256, %s199_s2, [#allocation4]  }
  0x36   :  { %140 = dma.done.wait [#allocation4], 256  }
  0x37   :  { %141 = vsyncadd [#allocation4], 4294967040 }
  0x38   :  { %61 = vsyncpa [#allocation3], 1 }
  0x39   :  { %62 = vsyncpa [#allocation6], 1 }
  0x3a   :  { %63 = vsyncpa [#allocation4], 1 }

</bundles_post_ra>
